<compile_context>
chip_gen: v5e
topology: v5e:2x2
jax: 0.10.0
libtpu: 0.0.40
codegen_flags: <defaults>
</compile_context>

<pallas_src>
import math
import functools

import jax
import jax.numpy as jnp
from jax.experimental import pallas as pl
from jax.experimental.pallas import tpu as pltpu


# --------------------------- in-kernel helpers -------------------------------

def _ln(x, g, b, eps=1e-5):
    """LayerNorm over the last dim; x:(S,E) f32, g/b:(1,E)."""
    mean = jnp.mean(x, axis=-1, keepdims=True)
    var = jnp.mean(jnp.square(x - mean), axis=-1, keepdims=True)
    return (x - mean) * jax.lax.rsqrt(var + eps) * g + b


def _gelu_exact(x):
    # exact (erf-based) GELU == torch.nn.GELU() default
    return 0.5 * x * (1.0 + jax.lax.erf(x * (1.0 / math.sqrt(2.0))))


# --------------------------- Pallas kernels ----------------------------------

def _embed_kernel(patches_ref, wp_ref, bp_ref, cls_ref, pos_ref, o_ref):
    """Patch projection + CLS token concat + positional embedding (one batch elem)."""
    p = patches_ref[0].astype(jnp.float32)                    # (nP, C*p*p)
    w = wp_ref[...].astype(jnp.float32)                       # (C*p*p, E)
    tok = jnp.dot(p, w, preferred_element_type=jnp.float32) + bp_ref[...]
    cls = cls_ref[...].astype(jnp.float32)                    # (1, E)
    seq = jnp.concatenate([cls, tok], axis=0)                 # (S, E)
    o_ref[0] = (seq + pos_ref[0].astype(jnp.float32)).astype(o_ref.dtype)


def patch_embed(patches, w_patch, b_patch, cls_token, pos_emb):
    """patches: (B, nP, patch_dim) -> (B, nP+1, E) token sequence."""
    B, nP, Pd = patches.shape
    E = w_patch.shape[1]
    S = nP + 1
    return pl.pallas_call(
        _embed_kernel,
        out_shape=jax.ShapeDtypeStruct((B, S, E), patches.dtype),
        grid=(B,),
        in_specs=[
            pl.BlockSpec((1, nP, Pd), lambda b: (b, 0, 0)),
            pl.BlockSpec((Pd, E), lambda b: (0, 0)),
            pl.BlockSpec((1, E), lambda b: (0, 0)),
            pl.BlockSpec((1, E), lambda b: (0, 0)),
            pl.BlockSpec((1, S, E), lambda b: (0, 0, 0)),
        ],
        out_specs=pl.BlockSpec((1, S, E), lambda b: (b, 0, 0)),
        compiler_params=pltpu.CompilerParams(dimension_semantics=("parallel",)),
    )(patches, w_patch, b_patch.reshape(1, E), cls_token.reshape(1, E), pos_emb)


def _block_kernel(x_ref, ln1g_ref, ln1b_ref, wqkv_ref, bqkv_ref,
                  wproj_ref, bproj_ref, ln2g_ref, ln2b_ref,
                  wfc1_ref, bfc1_ref, wfc2_ref, bfc2_ref, o_ref, *, heads):
    """Fully fused transformer block for one batch element's (S, E) sequence."""
    x = x_ref[0].astype(jnp.float32)                          # (S, E)
    S, E = x.shape
    Dh = E // heads
    scale = 1.0 / math.sqrt(Dh)

    # ---- attention sub-block: LN1 fused into the QKV matmul -----------------
    h1 = _ln(x, ln1g_ref[...], ln1b_ref[...])
    qkv = (jnp.dot(h1, wqkv_ref[...], preferred_element_type=jnp.float32)
           + bqkv_ref[...])                                   # (S, 3E)

    # Per-head attention; head layout matches the PyTorch reference:
    # qkv.reshape(B,S,H,3*Dh).chunk(3,-1) => head h uses columns
    # [h*3Dh, h*3Dh+Dh) / [+Dh, +2Dh) / [+2Dh, +3Dh).
    # Head outputs are folded directly into the output projection:
    #   attn @ W_proj == sum_h  o_h @ W_proj[h*Dh:(h+1)*Dh, :]
    wproj = wproj_ref[...].astype(jnp.float32)                # (E, E)
    a = jnp.zeros((S, E), jnp.float32)
    for h in range(heads):
        base = h * 3 * Dh
        qh = qkv[:, base:base + Dh] * scale                   # (S, Dh)
        kh = qkv[:, base + Dh:base + 2 * Dh]                  # (S, Dh)
        vh = qkv[:, base + 2 * Dh:base + 3 * Dh]              # (S, Dh)
        s = jnp.dot(qh, kh.T, preferred_element_type=jnp.float32)  # (S, S)
        m = jnp.max(s, axis=-1, keepdims=True)
        p = jnp.exp(s - m)
        p = p * pl.reciprocal(jnp.sum(p, axis=-1, keepdims=True), approx=True)
        oh = jnp.dot(p, vh, preferred_element_type=jnp.float32)    # (S, Dh)
        a = a + jnp.dot(oh, wproj[h * Dh:(h + 1) * Dh, :],
                        preferred_element_type=jnp.float32)         # (S, E)
    x = x + a + bproj_ref[...]

    # ---- MLP sub-block: LN2 fused into the fc1 matmul ------------------------
    h2 = _ln(x, ln2g_ref[...], ln2b_ref[...])
    f = (jnp.dot(h2, wfc1_ref[...], preferred_element_type=jnp.float32)
         + bfc1_ref[...])
    f = _gelu_exact(f)
    f = (jnp.dot(f, wfc2_ref[...], preferred_element_type=jnp.float32)
         + bfc2_ref[...])
    o_ref[0] = (x + f).astype(o_ref.dtype)


def transformer_block(seq, blk, *, heads):
    """seq: (B, S, E) -> (B, S, E); one fused Pallas call, grid over batch."""
    B, S, E = seq.shape
    M = blk["w_fc1"].shape[1]
    kernel = functools.partial(_block_kernel, heads=heads)
    row = lambda v: v.reshape(1, -1)

    def full2d(shape):
        return pl.BlockSpec(shape, lambda b: (0, 0))

    return pl.pallas_call(
        kernel,
        out_shape=jax.ShapeDtypeStruct((B, S, E), seq.dtype),
        grid=(B,),
        in_specs=[
            pl.BlockSpec((1, S, E), lambda b: (b, 0, 0)),     # sequence
            full2d((1, E)), full2d((1, E)),                   # ln1 gamma/beta
            full2d((E, 3 * E)), full2d((1, 3 * E)),           # qkv
            full2d((E, E)), full2d((1, E)),                   # proj
            full2d((1, E)), full2d((1, E)),                   # ln2 gamma/beta
            full2d((E, M)), full2d((1, M)),                   # fc1
            full2d((M, E)), full2d((1, E)),                   # fc2
        ],
        out_specs=pl.BlockSpec((1, S, E), lambda b: (b, 0, 0)),
        compiler_params=pltpu.CompilerParams(dimension_semantics=("parallel",)),
    )(seq,
      row(blk["ln1_g"]), row(blk["ln1_b"]),
      blk["w_qkv"], row(blk["b_qkv"]),
      blk["w_proj"], row(blk["b_proj"]),
      row(blk["ln2_g"]), row(blk["ln2_b"]),
      blk["w_fc1"], row(blk["b_fc1"]),
      blk["w_fc2"], row(blk["b_fc2"]))


def _head_kernel(x_ref, g_ref, b_ref, w_ref, bh_ref, o_ref):
    x = x_ref[...].astype(jnp.float32)                        # (B, E)
    h = _ln(x, g_ref[...], b_ref[...])
    y = jnp.dot(h, w_ref[...], preferred_element_type=jnp.float32) + bh_ref[...]
    o_ref[...] = y.astype(o_ref.dtype)


def mlp_head(cls_out, g, b, w, bh):
    """LayerNorm + Linear classification head on the CLS token. (B,E)->(B,C)."""
    B, E = cls_out.shape
    C = w.shape[1]
    return pl.pallas_call(
        _head_kernel,
        out_shape=jax.ShapeDtypeStruct((B, C), cls_out.dtype),
        grid=(1,),
        in_specs=[pl.BlockSpec((B, E), lambda i: (0, 0)),
                  pl.BlockSpec((1, E), lambda i: (0, 0)),
                  pl.BlockSpec((1, E), lambda i: (0, 0)),
                  pl.BlockSpec((E, C), lambda i: (0, 0)),
                  pl.BlockSpec((1, C), lambda i: (0, 0))],
        out_specs=pl.BlockSpec((B, C), lambda i: (0, 0)),
    )(cls_out, g.reshape(1, E), b.reshape(1, E), w, bh.reshape(1, C))


# --------------------------- Parameter init ----------------------------------

def xavier_uniform(key, shape, fan_in, fan_out):
    bound = math.sqrt(6.0 / (fan_in + fan_out))
    return jax.random.uniform(key, shape, jnp.float32, -bound, bound)


def trunc_normal(key, shape, std=0.02):
    return std * jax.random.truncated_normal(key, -2.0, 2.0, shape, jnp.float32)


def init_vit_params(key, *, in_channels, patch_size, num_patches, embed_dim,
                    depth, heads, mlp_dim, num_classes):
    keys = jax.random.split(key, 4 + depth)
    patch_dim = in_channels * patch_size * patch_size
    params = {}
    # Conv2d(in_ch, embed_dim, k=p, stride=p) as a matmul over flattened patches.
    # init_weights applies xavier_uniform_ to Conv2d: fan_in=C*p*p, fan_out=E*p*p.
    params["w_patch"] = xavier_uniform(
        keys[0], (patch_dim, embed_dim),
        fan_in=patch_dim, fan_out=embed_dim * patch_size * patch_size)
    params["b_patch"] = jnp.zeros((embed_dim,), jnp.float32)
    params["cls_token"] = trunc_normal(keys[1], (1, 1, embed_dim))
    params["pos_emb"] = trunc_normal(keys[2], (1, num_patches + 1, embed_dim))

    blocks = []
    for d in range(depth):
        bk = jax.random.split(keys[4 + d], 4)
        blocks.append(dict(
            ln1_g=jnp.ones((embed_dim,), jnp.float32),
            ln1_b=jnp.zeros((embed_dim,), jnp.float32),
            w_qkv=xavier_uniform(bk[0], (embed_dim, 3 * embed_dim),
                                 fan_in=embed_dim, fan_out=3 * embed_dim),
            b_qkv=jnp.zeros((3 * embed_dim,), jnp.float32),
            w_proj=xavier_uniform(bk[1], (embed_dim, embed_dim),
                                  fan_in=embed_dim, fan_out=embed_dim),
            b_proj=jnp.zeros((embed_dim,), jnp.float32),
            ln2_g=jnp.ones((embed_dim,), jnp.float32),
            ln2_b=jnp.zeros((embed_dim,), jnp.float32),
            w_fc1=xavier_uniform(bk[2], (embed_dim, mlp_dim),
                                 fan_in=embed_dim, fan_out=mlp_dim),
            b_fc1=jnp.zeros((mlp_dim,), jnp.float32),
            w_fc2=xavier_uniform(bk[3], (mlp_dim, embed_dim),
                                 fan_in=mlp_dim, fan_out=embed_dim),
            b_fc2=jnp.zeros((embed_dim,), jnp.float32),
        ))
    params["blocks"] = blocks

    params["head_ln_g"] = jnp.ones((embed_dim,), jnp.float32)
    params["head_ln_b"] = jnp.zeros((embed_dim,), jnp.float32)
    params["w_head"] = xavier_uniform(keys[3], (embed_dim, num_classes),
                                      fan_in=embed_dim, fan_out=num_classes)
    params["b_head"] = jnp.zeros((num_classes,), jnp.float32)
    return params


# --------------------------- Forward pass ------------------------------------

def vit_forward(x, params, *, patch_size, heads):
    B, C, H, W = x.shape
    p = patch_size
    nP = (H // p) * (W // p)

    # Unfold NCHW image into (c, ph, pw)-ordered patch vectors (plain-JAX layout
    # glue; matches Conv2d(stride=p) + Flatten(2) + permute in the reference).
    patches = (x.reshape(B, C, H // p, p, W // p, p)
                 .transpose(0, 2, 4, 1, 3, 5)
                 .reshape(B, nP, C * p * p))

    # PatchEmbedding (fused patch matmul + CLS + pos-emb); dropout = identity.
    seq = patch_embed(patches, params["w_patch"], params["b_patch"],
                      params["cls_token"], params["pos_emb"])

    # Transformer encoder: one fused Pallas call per block.
    # TODO(synk): for ViT-B-scale models add row tiling inside the block kernel
    # so per-tile VMEM stays within v7x's 64 MiB budget; unnecessary at this size.
    for blk in params["blocks"]:
        seq = transformer_block(seq, blk, heads=heads)

    # Classification head on the CLS token.
    cls_out = seq[:, 0, :]                                    # (B, E)
    return mlp_head(cls_out, params["head_ln_g"], params["head_ln_b"],
                    params["w_head"], params["b_head"])


# --------------------------- Main ---------------------------------------------

if __name__ == "__main__":
    IMAGE_SIZE, PATCH_SIZE, IN_CH = 16, 4, 4
    NUM_PATCHES = (IMAGE_SIZE // PATCH_SIZE) ** 2             # 16 patches -> S = 17
    EMBED_DIM, NUM_CLASSES, DEPTH, HEADS, MLP_DIM = 32, 10, 2, 4, 64
    BATCH = 2

    key = jax.random.PRNGKey(0)
    pkey, xkey = jax.random.split(key)
    params = init_vit_params(
        pkey, in_channels=IN_CH, patch_size=PATCH_SIZE, num_patches=NUM_PATCHES,
        embed_dim=EMBED_DIM, depth=DEPTH, heads=HEADS, mlp_dim=MLP_DIM,
        num_classes=NUM_CLASSES)

    x = jax.random.normal(xkey, (BATCH, IN_CH, IMAGE_SIZE, IMAGE_SIZE), jnp.float32)

    logits = vit_forward(x, params, patch_size=PATCH_SIZE, heads=HEADS)
    jax.block_until_ready(logits)
    assert logits.shape == (BATCH, NUM_CLASSES)
    assert bool(jnp.all(jnp.isfinite(logits)))
    print("KERNEL_OK")
</pallas_src>

<mosaic_0001>
module attributes {stable_mosaic.version = 11 : i64} {
  func.func @_embed_kernel(%arg0: i32, %arg1: memref<1x16x64xf32, #tpu.memory_space<vmem>>, %arg2: memref<64x32xf32, #tpu.memory_space<vmem>>, %arg3: memref<1x32xf32, #tpu.memory_space<vmem>>, %arg4: memref<1x32xf32, #tpu.memory_space<vmem>>, %arg5: memref<1x17x32xf32, #tpu.memory_space<vmem>>, %arg6: memref<1x17x32xf32, #tpu.memory_space<vmem>>) attributes {dimension_semantics = [#tpu.dimension_semantics<parallel>], iteration_bounds = array<i64: 2>, scalar_prefetch = 0 : i64, scratch_operands = 0 : i64, tpu.core_type = #tpu.core_type<tc>, window_params = [{transform_indices = @transform_0, window_bounds = array<i64: 1, 16, 64>}, {pipeline_mode = #tpu.pipeline_mode<synchronous>, transform_indices = @transform_1, window_bounds = array<i64: 64, 32>}, {pipeline_mode = #tpu.pipeline_mode<synchronous>, transform_indices = @transform_2, window_bounds = array<i64: 1, 32>}, {pipeline_mode = #tpu.pipeline_mode<synchronous>, transform_indices = @transform_3, window_bounds = array<i64: 1, 32>}, {pipeline_mode = #tpu.pipeline_mode<synchronous>, transform_indices = @transform_4, window_bounds = array<i64: 1, 17, 32>}, {transform_indices = @transform_5, window_bounds = array<i64: 1, 17, 32>}]} {
    %c0 = arith.constant 0 : index
    %c0_0 = arith.constant 0 : index
    %c0_1 = arith.constant 0 : index
    %0 = vector.load %arg1[%c0, %c0_0, %c0_1] : memref<1x16x64xf32, #tpu.memory_space<vmem>>, vector<1x16x64xf32>
    %1 = vector.shape_cast %0 : vector<1x16x64xf32> to vector<16x64xf32>
    %c0_2 = arith.constant 0 : index
    %c0_3 = arith.constant 0 : index
    %2 = vector.load %arg2[%c0_2, %c0_3] : memref<64x32xf32, #tpu.memory_space<vmem>>, vector<64x32xf32>
    %cst = arith.constant dense<0.000000e+00> : vector<16x32xf32>
    %3 = tpu.matmul %1, %2, %cst {dimension_numbers = #tpu.dot_dimension_numbers<[1], [0], [0], [1], [0, 0, 1, 1], [], []>} : vector<16x64xf32>, vector<64x32xf32>, vector<16x32xf32> -> vector<16x32xf32>
    %c0_4 = arith.constant 0 : index
    %c0_5 = arith.constant 0 : index
    %4 = vector.load %arg3[%c0_4, %c0_5] : memref<1x32xf32, #tpu.memory_space<vmem>>, vector<1x32xf32>
    %5 = vector.broadcast %4 : vector<1x32xf32> to vector<16x32xf32>
    %6 = arith.addf %3, %5 : vector<16x32xf32>
    %c0_6 = arith.constant 0 : index
    %c0_7 = arith.constant 0 : index
    %7 = vector.load %arg4[%c0_6, %c0_7] : memref<1x32xf32, #tpu.memory_space<vmem>>, vector<1x32xf32>
    %8 = tpu.concatenate %7, %6 in 0 : vector<1x32xf32>, vector<16x32xf32> -> vector<17x32xf32>
    %c0_8 = arith.constant 0 : index
    %c0_9 = arith.constant 0 : index
    %c0_10 = arith.constant 0 : index
    %9 = vector.load %arg5[%c0_8, %c0_9, %c0_10] : memref<1x17x32xf32, #tpu.memory_space<vmem>>, vector<1x17x32xf32>
    %10 = vector.shape_cast %9 : vector<1x17x32xf32> to vector<17x32xf32>
    %11 = arith.addf %8, %10 : vector<17x32xf32>
    %c0_11 = arith.constant 0 : index
    %c0_12 = arith.constant 0 : index
    %c0_13 = arith.constant 0 : index
    %12 = vector.load %arg6[%c0_11, %c0_12, %c0_13] : memref<1x17x32xf32, #tpu.memory_space<vmem>>, vector<1x17x32xf32>
    %13 = vector.shape_cast %12 : vector<1x17x32xf32> to vector<17x32xf32>
    %14 = vector.shape_cast %11 : vector<17x32xf32> to vector<1x17x32xf32>
    tpu.vector_store %arg6[%c0_11, %c0_12, %c0_13], %14 {strides = array<i32>} : memref<1x17x32xf32, #tpu.memory_space<vmem>>, vector<1x17x32xf32>,
    return
  }
  func.func @transform_0(%arg0: i32) -> (i32, i32, i32) {
    %c0_i32 = arith.constant 0 : i32
    %c0_i32_0 = arith.constant 0 : i32
    %c0_i32_1 = arith.constant 0 : i32
    return %arg0, %c0_i32, %c0_i32_0 : i32, i32, i32
  }
  func.func @transform_1(%arg0: i32) -> (i32, i32) {
    %c0_i32 = arith.constant 0 : i32
    %c0_i32_0 = arith.constant 0 : i32
    %c0_i32_1 = arith.constant 0 : i32
    return %c0_i32, %c0_i32_0 : i32, i32
  }
  func.func @transform_2(%arg0: i32) -> (i32, i32) {
    %c0_i32 = arith.constant 0 : i32
    %c0_i32_0 = arith.constant 0 : i32
    %c0_i32_1 = arith.constant 0 : i32
    return %c0_i32, %c0_i32_0 : i32, i32
  }
  func.func @transform_3(%arg0: i32) -> (i32, i32) {
    %c0_i32 = arith.constant 0 : i32
    %c0_i32_0 = arith.constant 0 : i32
    %c0_i32_1 = arith.constant 0 : i32
    return %c0_i32, %c0_i32_0 : i32, i32
  }
  func.func @transform_4(%arg0: i32) -> (i32, i32, i32) {
    %c0_i32 = arith.constant 0 : i32
    %c0_i32_0 = arith.constant 0 : i32
    %c0_i32_1 = arith.constant 0 : i32
    %c0_i32_2 = arith.constant 0 : i32
    return %c0_i32, %c0_i32_0, %c0_i32_1 : i32, i32, i32
  }
  func.func @transform_5(%arg0: i32) -> (i32, i32, i32) {
    %c0_i32 = arith.constant 0 : i32
    %c0_i32_0 = arith.constant 0 : i32
    %c0_i32_1 = arith.constant 0 : i32
    return %arg0, %c0_i32, %c0_i32_0 : i32, i32, i32
  }
}

</mosaic_0001>

<bundles_post_ra>
// kernel: tpu_custom_call.1
= control target key start
LH: loop header
LB: loop body
LE: loop exit
PB: predicated region body
PF: predicated region fallthrough
CT: control target
= control target key end

     0   :  { %s415_s18 = smov 0   ;;  %s475_s0 = inlined_call_operand.vmem [shape: f32[2,16,64], index: 0, kind: input, shape index: {}]   ;;  %s476_s1 = inlined_call_operand.vmem [shape: f32[64,32], index: 1, kind: input, shape index: {}]   ;;  %s477_s2 = inlined_call_operand.vmem [shape: f32[1,32], index: 2, kind: input, shape index: {}]   ;;  %s478_s3 = inlined_call_operand.vmem [shape: f32[1,32], index: 3, kind: input, shape index: {}]   ;;  %s479_s4 = inlined_call_operand.vmem [shape: f32[1,17,32], index: 4, kind: input, shape index: {}]   ;;  %s480_s5 = inlined_call_operand.vmem [shape: f32[2,17,32], index: 5, kind: output, shape index: {}]  }
   0x1 LB: > { %s346_s19 = sadd.s32 4294967295, %s383_s18   ;;  %p350_p0 = scmp.ge.s32.totalorder %s383_s18, 1  ;;  %s383_s18 = sphi %s415_s18, %s15_s18  }
   0x2   : > { %p187_p1 = scmp.lt.s32.totalorder %s383_s18, 3 }
   0x4   : > { %p188_p2 = pnand %p350_p0, %p187_p1 }
   0x5   : > { %p215_p3 = scmp.lt.s32.totalorder (!%p188_p2), %s346_s19, 1 }
   0x6   : > { %191 = sbr.rel (%p188_p2) target bundleno = 162 (0xa2), region = 40 }
   0xb   : > { %v234_v0 = vld [vmem:[%s476_s1 + $0x38] sm:$0xff]  ;;  %v233_v1 = vld [vmem:[%s476_s1 + $0x30] sm:$0xff]  ;;  %v232_v2 = vld [vmem:[%s476_s1 + $0x28] sm:$0xff]  ;;  %s482_s19 = smov (!%p215_p3, %s346_s19), 1  ;;  %vm239_vm0 = vcmask 523264   ;;  %vm272_vm1 = vcmask 1040384  }
   0xc   : > { %254 = vmatpush.msra.mxu0 %v234_v0  ;;  %359 = vmatpush.msra.mxu1 %v234_v0  ;;  %v231_v3 = vld [vmem:[%s476_s1 + $0x20] sm:$0xff]  ;;  %v230_v4 = vld [vmem:[%s476_s1 + $0x18] sm:$0xff]  ;;  %s358_s30 = sshll.u32 %s482_s19, 4  ;;  %v229_v5 = vld [vmem:[%s476_s1 + $0x10] sm:$0xff]  ;;  %s367_s17 = smul.u32 24, %s482_s19  ;;  %vm289_vm2 = vcmask 253952  }
   0xd   : > { %v228_v6 = vld [vmem:[%s476_s1 + $0x8] sm:$0xff]  ;;  %s219_s12 = scalar_lea.vmem %s475_s0, %s358_s30  ;;  %v227_v7 = vld [vmem:[%s476_s1] sm:$0xff]  ;;  %v282_v16 = vld [vmem:[%s479_s4 + $0x10] sm:$0x1]  ;;  %vm286_vm3 = vcmask 261120  }
   0xe   : > { %255 = vmatpush.msra.mxu0 %v233_v1  ;;  %360 = vmatpush.msra.mxu1 %v233_v1  ;;  %v225_v8 = vld [vmem:[%s219_s12] sm:$0xff]  ;;  %v226_v9 = vld [vmem:[%s219_s12 + $0x8] sm:$0xff]  ;;  %s224_s29 = scalar_lea.vmem %s480_s5, %s367_s17 }
   0xf   : > { %v376_v10 = vld [vmem:[%s477_s2] ss:$0 sm:$0xff]  ;;  %v281_v20 = vld [vmem:[%s479_s4 + $0x8] sm:$0xff] }
  0x10   : > { %256 = vmatpush.msra.mxu0 %v232_v2  ;;  %361 = vmatpush.msra.mxu1 %v232_v2  ;;  %v269_v15 = vld [vmem:[%s478_s3] sm:$0x1] }
  0x11   : > { %v280_v18 = vld [vmem:[%s479_s4] sm:$0xff] }
  0x12   : > { %257 = vmatpush.msra.mxu0 %v231_v3  ;;  %362 = vmatpush.msra.mxu1 %v231_v3 }
  0x14   : > { %258 = vmatpush.msra.mxu0 %v230_v4  ;;  %363 = vmatpush.msra.mxu1 %v230_v4 }
  0x16   : > { %259 = vmatpush.msra.mxu0 %v229_v5  ;;  %364 = vmatpush.msra.mxu1 %v229_v5 }
  0x18   : > { %260 = vmatpush.msra.mxu0 %v228_v6  ;;  %365 = vmatpush.msra.mxu1 %v228_v6 }
  0x1a   : > { %261 = vmatpush.msra.mxu0 %v227_v7  ;;  %366 = vmatpush.msra.mxu1 %v227_v7 }
  0x1b   : > { %354 = vmatmul.msk.f32.vlgmr.msra.gmra.mxu0 %vm239_vm0, %v225_v8  ;;  %355 = vmatmul.msk.f32.vlgmr.msra.gmra.mxu1 %vm239_vm0, %v226_v9 }
  0x98   : > { %v263_v11 = vpop.f32.mrf.mxu0  ;;  %v266_v12 = vpop.f32.mrf.mxu1 }
  0x99   : > { %v264_v13 = vadd.f32 %v376_v10, %v263_v11  ;;  %v267_v14 = vadd.f32 %v376_v10, %v266_v12 }
  0x9b   : > { %v273_v17 = vrot.slane %v264_v13, 7  ;;  %v274_v19 = vrot.slane %v267_v14, 7 }
  0x9d   : > { %v279_v21 = vsel %vm272_vm1, %v269_v15, %v273_v17  ;;  %v275_v22 = vsel %vm272_vm1, %v273_v17, %v274_v19  ;;  %v285_v23 = vadd.f32 %v282_v16, %v274_v19 }
  0x9e   : > { %v283_v24 = vadd.f32 %v280_v18, %v279_v21  ;;  %v284_v25 = vadd.f32 %v281_v20, %v275_v22 }
  0x9f   : > { %290 = vst.msk [vmem:[%s224_s29 + $0x10] sm:$0x1] %vm289_vm2, %v285_v23 }
  0xa0   : > { %287 = vst.msk [vmem:[%s224_s29] sm:$0xff] %vm286_vm3, %v283_v24 }
  0xa1   : > { %288 = vst.msk [vmem:[%s224_s29 + $0x8] sm:$0xff] %vm286_vm3, %v284_v25 }
  0xa2 PF: > { %s15_s18 = sadd.s32 1, %s383_s18  }
  0xa3   : > { %p12_p4 = scmp.ge.s32.totalorder %s15_s18, 4  }
  0xa5   :  { %14 = sbr.rel (!%p12_p4) target bundleno = 1 (0x1), region = 70 }

</bundles_post_ra>
